<compile_context>
chip_gen: v7x
topology: tpu7x:2x2x1
jax: 0.10.0
libtpu: 0.0.40
codegen_flags: <defaults>
</compile_context>

<pallas_src>
import functools

import jax
import jax.numpy as jnp
from jax import lax
from jax.experimental import pallas as pl
from jax.experimental.pallas import tpu as pltpu


def _round_up(x, m):
    return (x + m - 1) // m * m


def _sublane_pack(dtype):
    # Rows per native sublane tile: 8 for f32, 16 for bf16, 32 for int8/fp8.
    return max(8, 32 // jnp.dtype(dtype).itemsize)


# ---------------------------------------------------------------------------
# Kernel bodies
# ---------------------------------------------------------------------------

def _rhs_math(h, w1, b1, w2, b2):
    """dh = softplus(h @ w1 + b1) @ w2 + b2; f32 accumulation / f32 softplus."""
    md = w1.dtype
    z = jnp.dot(h.astype(md), w1, preferred_element_type=jnp.float32) + b1
    # torch.nn.Softplus(beta=1, threshold=20): x if x > 20 else log1p(exp(x)).
    sp = jnp.where(z > 20.0, z, jnp.log1p(jnp.exp(z)))
    dh = jnp.dot(sp.astype(md), w2, preferred_element_type=jnp.float32) + b2
    return dh


def _odefunc_kernel(h_ref, w1_ref, b1_ref, w2_ref, b2_ref, out_ref):
    dh = _rhs_math(h_ref[...], w1_ref[...], b1_ref[...], w2_ref[...], b2_ref[...])
    out_ref[...] = dh.astype(out_ref.dtype)


def _odefunc_euler_kernel(h_ref, w1_ref, b1_ref, w2_ref, b2_ref, out_ref, *,
                          nsteps, dt):
    """N explicit Euler steps fused in one kernel; state + weights stay in VMEM."""
    w1 = w1_ref[...]
    b1 = b1_ref[...]
    w2 = w2_ref[...]
    b2 = b2_ref[...]
    h0 = h_ref[...].astype(jnp.float32)

    def step(_, h):
        return h + dt * _rhs_math(h, w1, b1, w2, b2)

    h_final = lax.fori_loop(0, nsteps, step, h0)
    out_ref[...] = h_final.astype(out_ref.dtype)


# ---------------------------------------------------------------------------
# One-time parameter / state preparation (hoisted out of the per-step path)
# ---------------------------------------------------------------------------

def prepare_params(w1, b1, w2, b2, *, matmul_dtype=jnp.float32):
    """Pad + cast the ODEFunc parameters ONCE per solve.

    Zero padding preserves semantics: padded W1 cols / b1 lanes give z=0 in the
    pad lanes, the zero rows of padded W2 kill their contribution, and padded
    W2 cols / b2 lanes give 0 outputs which are sliced off by unpad_state.
    """
    H = w1.shape[0]
    Hp = _round_up(max(H, 128), 128)          # lane-dense: multiple of 128
    md = jnp.dtype(matmul_dtype)

    def pad2(x, rows, cols, dt):
        x = jnp.asarray(x, dt)
        return jnp.pad(x, ((0, rows - x.shape[0]), (0, cols - x.shape[1])))

    return dict(
        w1=pad2(w1, Hp, Hp, md),
        b1=pad2(jnp.reshape(b1, (1, -1)), 1, Hp, jnp.float32),
        w2=pad2(w2, Hp, Hp, md),
        b2=pad2(jnp.reshape(b2, (1, -1)), 1, Hp, jnp.float32),
        H=H, Hp=Hp, md=md,
    )


def pad_state(h, params, *, block_batch=512):
    """Pad h once into the lane-dense (Bp, Hp) layout used by the kernels.

    Activations are stored in the matmul dtype (bf16 halves HBM traffic on the
    bandwidth-bound large-B path); compute is f32 inside the kernel.
    """
    B, H = h.shape
    Hp, md = params["Hp"], params["md"]
    pack = _sublane_pack(md)
    Bp = _round_up(B, block_batch) if B >= block_batch else _round_up(B, pack)
    return jnp.pad(h.astype(md), ((0, Bp - B), (0, Hp - H)))


def unpad_state(hp, B, H):
    return hp[:B, :H]


# ---------------------------------------------------------------------------
# pallas_call wrappers
# ---------------------------------------------------------------------------

def _grid_and_specs(Bp, Hp, block_batch):
    TB = block_batch if Bp >= block_batch else Bp
    assert Bp % TB == 0, (Bp, TB)
    grid = (Bp // TB,)
    in_specs = [
        pl.BlockSpec((TB, Hp), lambda b: (b, 0)),   # h: tiled over batch (MXU M)
        pl.BlockSpec((Hp, Hp), lambda b: (0, 0)),   # w1: resident in VMEM
        pl.BlockSpec((1, Hp), lambda b: (0, 0)),    # b1: resident
        pl.BlockSpec((Hp, Hp), lambda b: (0, 0)),   # w2: resident
        pl.BlockSpec((1, Hp), lambda b: (0, 0)),    # b2: resident
    ]
    out_specs = pl.BlockSpec((TB, Hp), lambda b: (b, 0))
    return TB, grid, in_specs, out_specs


def _compiler_params(TB, Hp, act_dtype, w_dtype):
    kw = dict(dimension_semantics=("parallel",))
    ab = jnp.dtype(act_dtype).itemsize
    wb = jnp.dtype(w_dtype).itemsize
    # Rough double-buffered VMEM estimate (inputs/outputs) + f32 intermediates.
    est = (2 * 2 * Hp * Hp * wb + 2 * 2 * Hp * 4
           + 2 * 2 * TB * Hp * ab + 4 * TB * Hp * 4)
    if est > 16 * 1024 * 1024:   # above v5e's default scoped-VMEM limit
        kw["vmem_limit_bytes"] = int(min(est + (8 << 20), 100 << 20))
    return pltpu.CompilerParams(**kw)


def _cost(Bp, Hp, act_dtype, w_dtype, nsteps=1):
    ab = jnp.dtype(act_dtype).itemsize
    wb = jnp.dtype(w_dtype).itemsize
    return pl.CostEstimate(
        flops=int(nsteps * (2 * 2 * Bp * Hp * Hp + 2 * Bp * Hp)),
        transcendentals=int(nsteps * 2 * Bp * Hp),
        bytes_accessed=int(2 * Bp * Hp * ab + 2 * Hp * Hp * wb + 2 * 2 * Hp * 4),
    )


def odefunc_forward_padded(t, hp, params, *, block_batch=512):
    """One RHS evaluation dh = seq(h) on the pre-padded state. `t` is unused."""
    del t  # unused, kept for API parity with the PyTorch module
    Bp, Hp = hp.shape
    assert Hp == params["Hp"]
    TB, grid, in_specs, out_specs = _grid_and_specs(Bp, Hp, block_batch)
    return pl.pallas_call(
        _odefunc_kernel,
        out_shape=jax.ShapeDtypeStruct((Bp, Hp), hp.dtype),
        grid=grid,
        in_specs=in_specs,
        out_specs=out_specs,
        compiler_params=_compiler_params(TB, Hp, hp.dtype, params["w1"].dtype),
        cost_estimate=_cost(Bp, Hp, hp.dtype, params["w1"].dtype),
    )(hp, params["w1"], params["b1"], params["w2"], params["b2"])


def odefunc_euler_solve_padded(hp, params, *, dt, nsteps, block_batch=512):
    """Fused explicit-Euler solve: h <- h + dt * seq(h), `nsteps` times, in ONE
    pallas_call.  The state and both weight matrices stay resident in VMEM
    across all steps; the output aliases the input state buffer (no extra HBM
    round trip).  `hp` is consumed via input_output_aliases — do not reuse it.
    """
    Bp, Hp = hp.shape
    assert Hp == params["Hp"]
    TB, grid, in_specs, out_specs = _grid_and_specs(Bp, Hp, block_batch)
    kernel = functools.partial(_odefunc_euler_kernel, nsteps=int(nsteps), dt=float(dt))
    return pl.pallas_call(
        kernel,
        out_shape=jax.ShapeDtypeStruct((Bp, Hp), hp.dtype),
        grid=grid,
        in_specs=in_specs,
        out_specs=out_specs,
        input_output_aliases={0: 0},
        compiler_params=_compiler_params(TB, Hp, hp.dtype, params["w1"].dtype),
        cost_estimate=_cost(Bp, Hp, hp.dtype, params["w1"].dtype, nsteps=nsteps),
    )(hp, params["w1"], params["b1"], params["w2"], params["b2"])


def odefunc_forward(t, h, w1, b1, w2, b2, *, matmul_dtype=None, block_batch=512):
    """API-parity convenience wrapper for ODEFunc.forward(t, h).

    For ODE-solver use, call prepare_params()/pad_state() once per solve and
    then odefunc_forward_padded / odefunc_euler_solve_padded — that is the hot
    path with the per-call pad/cast/slice wrapper ops hoisted out.
    """
    md = matmul_dtype if matmul_dtype is not None else h.dtype
    params = prepare_params(w1, b1, w2, b2, matmul_dtype=md)
    hp = pad_state(h, params, block_batch=block_batch)
    dhp = odefunc_forward_padded(t, hp, params, block_batch=block_batch)
    return unpad_state(dhp, h.shape[0], h.shape[1]).astype(h.dtype)


# ---------------------------------------------------------------------------
# Init + reference
# ---------------------------------------------------------------------------

def init_params(key, hidden_dim, dtype=jnp.float32):
    """nn.Linear-style init: U(-1/sqrt(fan_in), 1/sqrt(fan_in))."""
    k1, k2, k3, k4 = jax.random.split(key, 4)
    bound = 1.0 / (hidden_dim ** 0.5)
    w1 = jax.random.uniform(k1, (hidden_dim, hidden_dim), dtype, -bound, bound)
    b1 = jax.random.uniform(k2, (1, hidden_dim), dtype, -bound, bound)
    w2 = jax.random.uniform(k3, (hidden_dim, hidden_dim), dtype, -bound, bound)
    b2 = jax.random.uniform(k4, (1, hidden_dim), dtype, -bound, bound)
    return w1, b1, w2, b2


def _reference(h, w1, b1, w2, b2):
    z = h @ w1 + b1
    sp = jnp.where(z > 20.0, z, jnp.log1p(jnp.exp(z)))
    return sp @ w2 + b2


if __name__ == "__main__":
    hidden_dim = 32
    batch = 8

    key = jax.random.PRNGKey(0)
    kh, kp, kb = jax.random.split(key, 3)
    h = jax.random.normal(kh, (batch, hidden_dim), jnp.float32)
    t = jnp.float32(0.0)  # unused by the module's forward
    w1, b1, w2, b2 = init_params(kp, hidden_dim)

    # 1) Exact-semantics single RHS eval (f32 MXU operands), module shape.
    dh = odefunc_forward(t, h, w1, b1, w2, b2)
    jax.block_until_ready(dh)
    ref = _reference(h, w1, b1, w2, b2)
    assert dh.shape == (batch, hidden_dim)
    assert jnp.allclose(dh, ref, atol=1e-5, rtol=1e-5)

    # 2) Hoisted-padding fast path: bf16 activations/weights on the MXU,
    #    f32 accumulation/softplus, batch-tiled grid (>1 "parallel" steps).
    big_batch = 1024
    hb = jax.random.normal(kb, (big_batch, hidden_dim), jnp.float32)
    params_bf16 = prepare_params(w1, b1, w2, b2, matmul_dtype=jnp.bfloat16)
    hbp = pad_state(hb, params_bf16, block_batch=512)          # pad once
    dhp = odefunc_forward_padded(t, hbp, params_bf16, block_batch=512)
    jax.block_until_ready(dhp)
    dh_big = unpad_state(dhp, big_batch, hidden_dim).astype(jnp.float32)
    ref_big = _reference(hb, w1, b1, w2, b2)
    assert dh_big.shape == (big_batch, hidden_dim)
    assert jnp.allclose(dh_big, ref_big, atol=5e-2, rtol=5e-2)

    # 3) Fused solver loop (the real deployment path): 16 explicit Euler steps
    #    in a single pallas_call, state + weights resident in VMEM throughout.
    params_f32 = prepare_params(w1, b1, w2, b2, matmul_dtype=jnp.float32)
    nsteps, dt = 16, 0.05
    hp0 = pad_state(h, params_f32, block_batch=512)
    hT_p = odefunc_euler_solve_padded(hp0, params_f32, dt=dt, nsteps=nsteps)
    jax.block_until_ready(hT_p)
    hT = unpad_state(hT_p, batch, hidden_dim)

    href = h
    for _ in range(nsteps):
        href = href + dt * _reference(href, w1, b1, w2, b2)
    assert hT.shape == (batch, hidden_dim)
    assert jnp.allclose(hT, href, atol=1e-3, rtol=1e-3)

    print("KERNEL_OK")
</pallas_src>

<mosaic_0001>
module attributes {stable_mosaic.version = 11 : i64} {
  func.func @_odefunc_kernel(%arg0: i32, %arg1: memref<8x128xf32, #tpu.memory_space<vmem>>, %arg2: memref<128x128xf32, #tpu.memory_space<vmem>>, %arg3: memref<1x128xf32, #tpu.memory_space<vmem>>, %arg4: memref<128x128xf32, #tpu.memory_space<vmem>>, %arg5: memref<1x128xf32, #tpu.memory_space<vmem>>, %arg6: memref<8x128xf32, #tpu.memory_space<vmem>>) attributes {dimension_semantics = [#tpu.dimension_semantics<parallel>], iteration_bounds = array<i64: 1>, scalar_prefetch = 0 : i64, scratch_operands = 0 : i64, tpu.core_type = #tpu.core_type<tc>, window_params = [{transform_indices = @transform_0, window_bounds = array<i64: 8, 128>}, {pipeline_mode = #tpu.pipeline_mode<synchronous>, transform_indices = @transform_1, window_bounds = array<i64: 128, 128>}, {pipeline_mode = #tpu.pipeline_mode<synchronous>, transform_indices = @transform_2, window_bounds = array<i64: 1, 128>}, {pipeline_mode = #tpu.pipeline_mode<synchronous>, transform_indices = @transform_3, window_bounds = array<i64: 128, 128>}, {pipeline_mode = #tpu.pipeline_mode<synchronous>, transform_indices = @transform_4, window_bounds = array<i64: 1, 128>}, {transform_indices = @transform_5, window_bounds = array<i64: 8, 128>}]} {
    %c0 = arith.constant 0 : index
    %c0_0 = arith.constant 0 : index
    %0 = vector.load %arg1[%c0, %c0_0] : memref<8x128xf32, #tpu.memory_space<vmem>>, vector<8x128xf32>
    %c0_1 = arith.constant 0 : index
    %c0_2 = arith.constant 0 : index
    %1 = vector.load %arg2[%c0_1, %c0_2] : memref<128x128xf32, #tpu.memory_space<vmem>>, vector<128x128xf32>
    %c0_3 = arith.constant 0 : index
    %c0_4 = arith.constant 0 : index
    %2 = vector.load %arg3[%c0_3, %c0_4] : memref<1x128xf32, #tpu.memory_space<vmem>>, vector<1x128xf32>
    %c0_5 = arith.constant 0 : index
    %c0_6 = arith.constant 0 : index
    %3 = vector.load %arg4[%c0_5, %c0_6] : memref<128x128xf32, #tpu.memory_space<vmem>>, vector<128x128xf32>
    %c0_7 = arith.constant 0 : index
    %c0_8 = arith.constant 0 : index
    %4 = vector.load %arg5[%c0_7, %c0_8] : memref<1x128xf32, #tpu.memory_space<vmem>>, vector<1x128xf32>
    %cst = arith.constant dense<0.000000e+00> : vector<8x128xf32>
    %5 = tpu.matmul %0, %1, %cst {dimension_numbers = #tpu.dot_dimension_numbers<[1], [0], [0], [1], [0, 0, 1, 1], [], []>} : vector<8x128xf32>, vector<128x128xf32>, vector<8x128xf32> -> vector<8x128xf32>
    %6 = vector.broadcast %2 : vector<1x128xf32> to vector<8x128xf32>
    %7 = arith.addf %5, %6 : vector<8x128xf32>
    %cst_9 = arith.constant 2.000000e+01 : f32
    %8 = vector.broadcast %cst_9 : f32 to vector<8x128xf32>
    %9 = arith.cmpf ogt, %7, %8 : vector<8x128xf32>
    %10 = math.exp %7 : vector<8x128xf32>
    %11 = math.log1p %10 : vector<8x128xf32>
    %12 = arith.select %9, %7, %11 : vector<8x128xi1>, vector<8x128xf32>
    %cst_10 = arith.constant dense<0.000000e+00> : vector<8x128xf32>
    %13 = tpu.matmul %12, %3, %cst_10 {dimension_numbers = #tpu.dot_dimension_numbers<[1], [0], [0], [1], [0, 0, 1, 1], [], []>} : vector<8x128xf32>, vector<128x128xf32>, vector<8x128xf32> -> vector<8x128xf32>
    %14 = vector.broadcast %4 : vector<1x128xf32> to vector<8x128xf32>
    %15 = arith.addf %13, %14 : vector<8x128xf32>
    %c0_11 = arith.constant 0 : index
    %c0_12 = arith.constant 0 : index
    %16 = vector.load %arg6[%c0_11, %c0_12] : memref<8x128xf32, #tpu.memory_space<vmem>>, vector<8x128xf32>
    tpu.vector_store %arg6[%c0_11, %c0_12], %15 {strides = array<i32>} : memref<8x128xf32, #tpu.memory_space<vmem>>, vector<8x128xf32>,
    return
  }
  func.func @transform_0(%arg0: i32) -> (i32, i32) {
    %c0_i32 = arith.constant 0 : i32
    %c0_i32_0 = arith.constant 0 : i32
    return %arg0, %c0_i32 : i32, i32
  }
  func.func @transform_1(%arg0: i32) -> (i32, i32) {
    %c0_i32 = arith.constant 0 : i32
    %c0_i32_0 = arith.constant 0 : i32
    %c0_i32_1 = arith.constant 0 : i32
    return %c0_i32, %c0_i32_0 : i32, i32
  }
  func.func @transform_2(%arg0: i32) -> (i32, i32) {
    %c0_i32 = arith.constant 0 : i32
    %c0_i32_0 = arith.constant 0 : i32
    %c0_i32_1 = arith.constant 0 : i32
    return %c0_i32, %c0_i32_0 : i32, i32
  }
  func.func @transform_3(%arg0: i32) -> (i32, i32) {
    %c0_i32 = arith.constant 0 : i32
    %c0_i32_0 = arith.constant 0 : i32
    %c0_i32_1 = arith.constant 0 : i32
    return %c0_i32, %c0_i32_0 : i32, i32
  }
  func.func @transform_4(%arg0: i32) -> (i32, i32) {
    %c0_i32 = arith.constant 0 : i32
    %c0_i32_0 = arith.constant 0 : i32
    %c0_i32_1 = arith.constant 0 : i32
    return %c0_i32, %c0_i32_0 : i32, i32
  }
  func.func @transform_5(%arg0: i32) -> (i32, i32) {
    %c0_i32 = arith.constant 0 : i32
    %c0_i32_0 = arith.constant 0 : i32
    return %arg0, %c0_i32 : i32, i32
  }
}

</mosaic_0001>

<bundles_post_ra>
// kernel: tpu_custom_call.1
= control target key start
LH: loop header
LB: loop body
LE: loop exit
PB: predicated region body
PF: predicated region fallthrough
CT: control target
= control target key end

     0   :  { %10 = vsyncpa [#allocation3], 0  ;;  %s653_s0 = inlined_call_operand.hbm [shape: f32[8,128], index: 0, kind: input, shape index: {}]   ;;  %s654_s1 = inlined_call_operand.hbm [shape: f32[128,128], index: 1, kind: input, shape index: {}]   ;;  %s655_s2 = inlined_call_operand.vmem [shape: f32[1,128], index: 2, kind: input, shape index: {}]   ;;  %s656_s3 = inlined_call_operand.hbm [shape: f32[128,128], index: 3, kind: input, shape index: {}]   ;;  %s657_s4 = inlined_call_operand.vmem [shape: f32[1,128], index: 4, kind: input, shape index: {}]   ;;  %s658_s5 = inlined_call_operand.hbm [shape: f32[8,128], index: 5, kind: output, shape index: {}]  }
   0x1   :  { %11 = vsyncpa [#allocation6], 0 }
   0x2   :  { %12 = vsyncpa [#allocation4], 0  ;;  %s538_s18 = smov [#allocation5]   ;;  %s444_s22 = scalar_lea.hbm %s654_s1, 2048 }
   0x3   :  { %s28_s19 = sshll.u32 %s538_s18, 4  ;;  %p445_p0 = scmp.ne.s32.totalorder %s654_s1, %s444_s22  ;;  %s29_s19 = int_to_ptr.vmem [resolvable:$true] %s28_s19 }
   0x4   :  { %p448_p1 = scmp.lt.u32.totalorder %s444_s22, %s654_s1 }
   0x6   :  { %p450_p2 = pnand %p448_p1, %p445_p0 }
   0x8   :  { %453 = shalt.err (!%p450_p2)
}
   0x9   :  { %s454_s27 = scalar_lea.vmem %s29_s19, 2048  ;;  %p459_p4 = scmp.lt.s32.totalorder %s29_s19, %s29_s19 }
   0xa   :  { %p455_p3 = scmp.ne.s32.totalorder %s29_s19, %s454_s27  ;;  %p460_p5 = scmp.lt.s32.totalorder %s454_s27, %s454_s27 }
   0xc   :  { %p461_p6 = por %p460_p5, %p459_p4 }
   0xe   :  { %p462_p7 = pnand %p461_p6, %p455_p3 }
  0x10   :  { %465 = shalt.err (!%p462_p7)
}
  0x11   :  { %s539_s28 = smov 128   ;;  %s540_s29 = smov 8  }
  0x12   :  { %34 = dma.hbm_to_vmem [thread:$0]  %s654_s1, 2048, %s29_s19, [#allocation6], %s539_s28, %s539_s28, %s540_s29  }
  0x13   :  { %s541_s7 = smov [#allocation2]   ;;  %s542_s9 = smov [#allocation7]  }
  0x14   :  { %s19_s8 = sshll.u32 %s541_s7, 4  ;;  %s42_s10 = sshll.u32 %s542_s9, 4  ;;  %s20_s8 = int_to_ptr.vmem [resolvable:$true] %s19_s8  ;;  %s43_s10 = int_to_ptr.vmem [resolvable:$true] %s42_s10 }
  0x15   :  { %s466_s13 = scalar_lea.hbm %s653_s0, 128 }
  0x16   :  { %p467_p8 = scmp.ne.s32.totalorder %s653_s0, %s466_s13  ;;  %p470_p9 = scmp.lt.u32.totalorder %s466_s13, %s653_s0 }
  0x18   :  { %p472_p10 = pnand %p470_p9, %p467_p8 }
  0x1a   :  { %475 = shalt.err (!%p472_p10)
}
  0x1b   :  { %s476_s1 = scalar_lea.vmem %s20_s8, 128  ;;  %p481_p12 = scmp.lt.s32.totalorder %s20_s8, %s20_s8 }
  0x1c   :  { %p477_p11 = scmp.ne.s32.totalorder %s20_s8, %s476_s1  ;;  %p482_p13 = scmp.lt.s32.totalorder %s476_s1, %s476_s1 }
  0x1e   :  { %p483_p0 = por %p482_p13, %p481_p12 }
  0x20   :  { %p484_p1 = pnand %p483_p0, %p477_p11 }
  0x22   :  { %487 = shalt.err (!%p484_p1)
}
  0x23   :  { %22 = dma.hbm_to_vmem [thread:$0]  %s653_s0, 128, %s20_s8, [#allocation3]  }
  0x24   :  { %s488_s22 = scalar_lea.hbm %s656_s3, 2048 }
  0x25   :  { %p489_p2 = scmp.ne.s32.totalorder %s656_s3, %s488_s22  ;;  %p492_p3 = scmp.lt.u32.totalorder %s488_s22, %s656_s3 }
  0x27   :  { %p494_p4 = pnand %p492_p3, %p489_p2 }
  0x29   :  { %497 = shalt.err (!%p494_p4)
}
  0x2a   :  { %s498_s27 = scalar_lea.vmem %s43_s10, 2048  ;;  %p503_p6 = scmp.lt.s32.totalorder %s43_s10, %s43_s10 }
  0x2b   :  { %p499_p5 = scmp.ne.s32.totalorder %s43_s10, %s498_s27  ;;  %p504_p7 = scmp.lt.s32.totalorder %s498_s27, %s498_s27 }
  0x2d   :  { %p505_p8 = por %p504_p7, %p503_p6 }
  0x2f   :  { %p506_p9 = pnand %p505_p8, %p499_p5 }
  0x31   :  { %509 = shalt.err (!%p506_p9)
}
  0x32   :  { %48 = dma.hbm_to_vmem [thread:$0]  %s656_s3, 2048, %s43_s10, [#allocation6], %s539_s28, %s539_s28, %s540_s29  }
  0x33   :  { %532 = dma.done.wait [#allocation3], 128  }
  0x34   :  { %533 = vsyncadd [#allocation3], 4294967168 }
  0x35   :  { %534 = dma.done.wait [#allocation6], 4096  }
  0x36   :  { %535 = vsyncadd [#allocation6], 4294963200  ;;  %v543_v0 = vmov 0.0|0.0   ;;  %vm544_vm0 = vmmov 0   ;;  %v545_v1 = vmov 0.0   ;;  %v61_v2 = vld [vmem:[#allocation5] sm:$0xff] }
  0x37   :  { %383 = vmatprep.subr.bf16.mxu0 %v543_v0  ;;  %345 = vmatprep.mubr.msk.f32.mxu0 %vm544_vm0, %v545_v1  ;;  %v62_v3 = vld [vmem:[#allocation5 + $0x8] sm:$0xff]  ;;  %v63_v4 = vld [vmem:[#allocation5 + $0x10] sm:$0xff]  ;;  %v64_v6 = vld [vmem:[#allocation5 + $0x18] sm:$0xff]  ;;  %s546_s6 = smov [#allocation8]  }
  0x38   :  { %407 = vmatprep.subr.bf16.mxu1 %v543_v0  ;;  %380 = vmatprep.mubr.msk.f32.mxu1 %vm544_vm0, %v545_v1  ;;  %v384_v5 = vpack.c.bf16 %v62_v3, %v61_v2  ;;  %v387_v7 = vpack.c.bf16 %v64_v6, %v63_v4  ;;  %v65_v8 = vld [vmem:[#allocation5 + $0x20] sm:$0xff]  ;;  %v66_v9 = vld [vmem:[#allocation5 + $0x28] sm:$0xff]  ;;  %v67_v11 = vld [vmem:[#allocation5 + $0x30] sm:$0xff]  ;;  %s267_s7 = sshll.u32 %s546_s6, 4  ;;  %s268_s7 = int_to_ptr.vmem [resolvable:$true] %s267_s7 }
  0x39   :  { %v390_v10 = vpack.c.bf16 %v66_v9, %v65_v8  ;;  %v68_v12 = vld [vmem:[#allocation5 + $0x38] sm:$0xff]  ;;  %v69_v14 = vld [vmem:[#allocation5 + $0x40] sm:$0xff]  ;;  %v70_v15 = vld [vmem:[#allocation5 + $0x48] sm:$0xff]  ;;  %s510_s8 = scalar_lea.vmem %s268_s7, 128  ;;  %p515_p11 = scmp.lt.s32.totalorder %s268_s7, %s268_s7 }
  0x3a   :  { %385 = vmatpush3.bf16.msra.mxu0 %v384_v5  ;;  %v393_v13 = vpack.c.bf16 %v68_v12, %v67_v11  ;;  %v396_v16 = vpack.c.bf16 %v70_v15, %v69_v14  ;;  %v71_v17 = vld [vmem:[#allocation5 + $0x50] sm:$0xff]  ;;  %v72_v18 = vld [vmem:[#allocation5 + $0x58] sm:$0xff]  ;;  %v73_v20 = vld [vmem:[#allocation5 + $0x60] sm:$0xff]  ;;  %p511_p10 = scmp.ne.s32.totalorder %s268_s7, %s510_s8  ;;  %p516_p12 = scmp.lt.s32.totalorder %s510_s8, %s510_s8 }
  0x3b   :  { %386 = vmatprep.subr.bf16.mxu0 %v543_v0  ;;  %v399_v19 = vpack.c.bf16 %v72_v18, %v71_v17  ;;  %v74_v21 = vld [vmem:[#allocation5 + $0x68] sm:$0xff]  ;;  %v75_v23 = vld [vmem:[#allocation5 + $0x70] sm:$0xff]  ;;  %v76_v24 = vld [vmem:[#allocation5 + $0x78] sm:$0xff] }
  0x3c   :  { %v402_v22 = vpack.c.bf16 %v74_v21, %v73_v20  ;;  %v405_v25 = vpack.c.bf16 %v76_v24, %v75_v23  ;;  %v60_v26 = vld [vmem:[#allocation2] sm:$0xff]  ;;  %v78_v27 = vld [vmem:[#allocation7] sm:$0xff]  ;;  %v79_v28 = vld [vmem:[#allocation7 + $0x8] sm:$0xff]  ;;  %p517_p13 = por %p516_p12, %p515_p11 }
  0x3d   :  { %v408_v29 = vpack.c.bf16 %v79_v28, %v78_v27  ;;  %v80_v30 = vld [vmem:[#allocation7 + $0x10] sm:$0xff]  ;;  %v81_v31 = vld [vmem:[#allocation7 + $0x18] sm:$0xff]  ;;  %v82_v33 = vld [vmem:[#allocation7 + $0x20] sm:$0xff] }
  0x3e   :  { %388 = vmatpush3.bf16.msra.mxu0 %v387_v7  ;;  %v411_v32 = vpack.c.bf16 %v81_v31, %v80_v30  ;;  %v83_v34 = vld [vmem:[#allocation7 + $0x28] sm:$0xff]  ;;  %v84_v36 = vld [vmem:[#allocation7 + $0x30] sm:$0xff]  ;;  %v85_v37 = vld [vmem:[#allocation7 + $0x38] sm:$0xff]  ;;  %p518_p0 = pnand %p517_p13, %p511_p10 }
  0x3f   :  { %389 = vmatprep.subr.bf16.mxu0 %v543_v0  ;;  %409 = vmatpush3.bf16.msra.mxu1 %v408_v29  ;;  %v414_v35 = vpack.c.bf16 %v83_v34, %v82_v33  ;;  %v417_v38 = vpack.c.bf16 %v85_v37, %v84_v36  ;;  %v86_v39 = vld [vmem:[#allocation7 + $0x40] sm:$0xff]  ;;  %v87_v40 = vld [vmem:[#allocation7 + $0x48] sm:$0xff]  ;;  %v88_v42 = vld [vmem:[#allocation7 + $0x50] sm:$0xff] }
  0x40   :  { %410 = vmatprep.subr.bf16.mxu1 %v543_v0  ;;  %v420_v41 = vpack.c.bf16 %v87_v40, %v86_v39  ;;  %v89_v43 = vld [vmem:[#allocation7 + $0x58] sm:$0xff]  ;;  %v90_v45 = vld [vmem:[#allocation7 + $0x60] sm:$0xff]  ;;  %v91_v46 = vld [vmem:[#allocation7 + $0x68] sm:$0xff] }
  0x41   :  { %v423_v44 = vpack.c.bf16 %v89_v43, %v88_v42  ;;  %v426_v47 = vpack.c.bf16 %v91_v46, %v90_v45  ;;  %v92_v48 = vld [vmem:[#allocation7 + $0x70] sm:$0xff]  ;;  %v93_v49 = vld [vmem:[#allocation7 + $0x78] sm:$0xff] }
  0x42   :  { %391 = vmatpush3.bf16.msra.mxu0 %v390_v10  ;;  %v429_v50 = vpack.c.bf16 %v93_v49, %v92_v48  ;;  %v277_v51 = vld [vmem:[%s655_s2] ss:$0 sm:$0xff] }
  0x43   :  { %392 = vmatprep.subr.bf16.mxu0 %v543_v0  ;;  %412 = vmatpush3.bf16.msra.mxu1 %v411_v32  ;;  %v278_v2 = vld [vmem:[%s657_s4] ss:$0 sm:$0xff] }
  0x44   :  { %413 = vmatprep.subr.bf16.mxu1 %v543_v0 }
  0x46   :  { %394 = vmatpush3.bf16.msra.mxu0 %v393_v13 }
  0x47   :  { %395 = vmatprep.subr.bf16.mxu0 %v543_v0  ;;  %415 = vmatpush3.bf16.msra.mxu1 %v414_v35 }
  0x48   :  { %416 = vmatprep.subr.bf16.mxu1 %v543_v0 }
  0x4a   :  { %397 = vmatpush3.bf16.msra.mxu0 %v396_v16 }
  0x4b   :  { %398 = vmatprep.subr.bf16.mxu0 %v543_v0  ;;  %418 = vmatpush3.bf16.msra.mxu1 %v417_v38 }
  0x4c   :  { %419 = vmatprep.subr.bf16.mxu1 %v543_v0 }
  0x4e   :  { %400 = vmatpush3.bf16.msra.mxu0 %v399_v19 }
  0x4f   :  { %401 = vmatprep.subr.bf16.mxu0 %v543_v0  ;;  %421 = vmatpush3.bf16.msra.mxu1 %v420_v41 }
  0x50   :  { %422 = vmatprep.subr.bf16.mxu1 %v543_v0 }
  0x52   :  { %403 = vmatpush3.bf16.msra.mxu0 %v402_v22 }
  0x53   :  { %404 = vmatprep.subr.bf16.mxu0 %v543_v0  ;;  %424 = vmatpush3.bf16.msra.mxu1 %v423_v44 }
  0x54   :  { %425 = vmatprep.subr.bf16.mxu1 %v543_v0 }
  0x56   :  { %406 = vmatpush3.bf16.msra.mxu0 %v405_v25 }
  0x57   :  { %427 = vmatpush3.bf16.msra.mxu1 %v426_v47 }
  0x58   :  { %428 = vmatprep.subr.bf16.mxu1 %v543_v0 }
  0x59   :  { %346 = vmatmul.mubr.f32.vlgmr.msra.gmra.mrb[0].mxu0 %v60_v26 }
  0x5b   :  { %430 = vmatpush3.bf16.msra.mxu1 %v429_v50 }
 0x12c   :  { %v167_v52 = vpop.f32.mrb[0].mxu0 }
 0x12d   :  { %v168_v53 = vadd.f32 %v277_v51, %v167_v52  ;;  %v347_v54 = vpop.f32.mrb[1].mxu0 }
 0x12f   :  { %v172_v55 = vmul.f32 1.442695, %v168_v53  ;;  %vm171_vm2 = vcmp.gt.f32.partialorder %v168_v53, 20.0 }
 0x131   :  { %440 = vpow2.f32 %v172_v55 }
 0x13b   :  { %v441_v56 = vpop.eup %440 }
 0x13c   :  { %v174_v57 = vadd.f32 1.0, %v441_v56  ;;  %v177_v58 = vmul.f32 -0.5, %v441_v56  ;;  %v180_v60 = vand.u32 2147483647, %v441_v56 }
 0x13e   :  { %442 = vlog2.f32 %v174_v57  ;;  %v178_v59 = vadd.f32 1.0, %v177_v58  ;;  %vm181_vm1 = vcmp.lt.f32.partialorder %v180_v60, 0.0004427343 }
 0x140   :  { %v179_v63 = vmul.f32 %v441_v56, %v178_v59 }
 0x148   :  { %v443_v61 = vpop.eup %442 }
 0x149   :  { %v176_v62 = vmul.f32 0.6931472, %v443_v61 }
 0x14b   :  { %v182_v0 = vsel %vm181_vm1, %v179_v63, %v176_v62 }
 0x14c   :  { %v183_v1 = vsel %vm171_vm2, %v168_v53, %v182_v0 }
 0x14d   :  { %381 = vmatmul.mubr.f32.vlgmr.msra.gmra.mrb[0].mxu1 %v183_v1 }
 0x220   :  { %v256_v3 = vpop.f32.mrb[0].mxu1 }
 0x221   :  { %v257_v4 = vadd.f32 %v278_v2, %v256_v3  ;;  %v382_v5 = vpop.f32.mrb[1].mxu1 }
 0x223   :  { %260 = vst [vmem:[#allocation8] sm:$0xff] %v257_v4 }
 0x224   :  { %521 = shalt.err (!%p518_p0)
}
 0x225   :  { %s522_s11 = scalar_lea.hbm %s658_s5, 128 }
 0x226   :  { %p523_p1 = scmp.ne.s32.totalorder %s658_s5, %s522_s11  ;;  %p526_p2 = scmp.lt.u32.totalorder %s522_s11, %s658_s5 }
 0x228   :  { %p528_p3 = pnand %p526_p2, %p523_p1 }
 0x22a   :  { %531 = shalt.err (!%p528_p3)
}
 0x22b   :  { %270 = dma.vmem_to_hbm [thread:$0]  %s268_s7, 128, %s658_s5, [#allocation4]  }
 0x22c   :  { %536 = dma.done.wait [#allocation4], 128  }
 0x22d   :  { %537 = vsyncadd [#allocation4], 4294967168 }
 0x22e   :  { %274 = vsyncpa [#allocation3], 1 }
 0x22f   :  { %275 = vsyncpa [#allocation6], 1 }
 0x230   :  { %276 = vsyncpa [#allocation4], 1 }

</bundles_post_ra>
